<compile_context>
chip_gen: v5e
topology: v5e:2x2
jax: 0.10.0
libtpu: 0.0.40
codegen_flags: <defaults>
</compile_context>

<pallas_src>
import functools

import jax
import jax.numpy as jnp
from jax.experimental import pallas as pl
from jax.experimental.pallas import tpu as pltpu

NEG_INF = -1e8   # fill value used by weakvg's mask_softmax for masked logits
COS_EPS = 1e-8   # torch.cosine_similarity eps


# --------------------------------------------------------------------------- #
# Kernel
# --------------------------------------------------------------------------- #
def similarity_kernel(t_feat_ref, v_feat_ref, t_mask_ref, v_mask_ref,
                      c_pred_ref, c_mask_ref,
                      scores_ref, mm_ref, cp_ref, *, omega, num_vb, num_prop):
    """One grid step handles TB text-batches.

    Refs (all 2-D; lane axis = bp = b*p, sublane axis = tb*q):
      t_feat_ref : (tb*q, d)    L2-normalized textual features
      v_feat_ref : (b*p,  d)    L2-normalized visual features (grid-invariant)
      t_mask_ref : (tb*q, 1)    textual mask (f32)
      v_mask_ref : (1,  b*p)    visual mask (f32, grid-invariant)
      c_pred_ref : (tb*q, b*p)  concepts logits (f32)
      c_mask_ref : (tb*q, b*p)  concepts mask (int8)
      outputs    : (tb*q, b*p)  scores / multimodal_pred / concepts_pred
    """
    bv, p = num_vb, num_prop
    bp = v_feat_ref.shape[0]

    # One wide MXU matmul: cosine similarity of pre-normalized features.
    sim = jax.lax.dot_general(
        t_feat_ref[...], v_feat_ref[...], (((1,), (1,)), ((), ())),
        preferred_element_type=jnp.float32)                              # (tb*q, bp)

    mm_mask = (t_mask_ref[...] * v_mask_ref[...]) > 0.0                  # (tb*q, bp)
    c_mask = c_mask_ref[...] != 0                                        # (tb*q, bp)

    # Segment indicator S[j, k] = 1 iff lane j (= k*p + l) belongs to visual batch k.
    lane = jax.lax.broadcasted_iota(jnp.int32, (bp, bv), 0)
    lo = jax.lax.broadcasted_iota(jnp.int32, (bp, bv), 1) * p
    seg = ((lane >= lo) & (lane < lo + p)).astype(jnp.float32)           # (bp, bv)

    def seg_softmax(logits, mask):
        # weakvg's mask_softmax (fill with NEG_INF) + softmax over each length-p lane
        # segment (the proposal axis), computed lane-dense (no lane-splitting):
        #   * shift by the row-wide max (exact for softmax; logits here are
        #     cosine-similarity scale, so no unmasked segment underflows wholesale),
        #   * segmented sum and broadcast of 1/sum via two tiny MXU matmuls.
        x = jnp.where(mask, logits, NEG_INF)
        x = x - jnp.max(x, axis=-1, keepdims=True)
        e = jnp.where(mask, jnp.exp(x), 0.0)                             # (tb*q, bp)
        denom = jax.lax.dot_general(e, seg, (((1,), (0,)), ((), ())),
                                    preferred_element_type=jnp.float32)  # (tb*q, bv)
        pos = denom > 0.0
        inv = jnp.where(pos, 1.0 / jnp.where(pos, denom, 1.0), 0.0)
        inv_b = jax.lax.dot_general(inv, seg, (((1,), (1,)), ((), ())),
                                    preferred_element_type=jnp.float32)  # (tb*q, bp)
        # Fully-masked segment: the reference fills every logit with NEG_INF and the
        # softmax degenerates to uniform 1/p (only `scores` is later zeroed there).
        return jnp.where(inv_b > 0.0, e * inv_b, 1.0 / p)

    mm_pred = seg_softmax(sim, mm_mask)
    cp_pred = seg_softmax(c_pred_ref[...], c_mask)

    scores = omega * mm_pred + (1.0 - omega) * cp_pred
    scores_ref[...] = jnp.where(jnp.logical_and(mm_mask, c_mask), scores, 0.0)
    mm_ref[...] = mm_pred
    cp_ref[...] = cp_pred


# --------------------------------------------------------------------------- #
# Generation-aware tiling / VMEM planning
# --------------------------------------------------------------------------- #
def _round_up(x, m):
    return ((x + m - 1) // m) * m


def _block_bytes(rows, cols, itemsize):
    """(sublane, 128)-tile-padded VMEM bytes of a 2-D block."""
    sub = 8 * (4 // itemsize)          # 8 rows/tile for f32, 32 for int8
    return _round_up(rows, sub) * _round_up(max(cols, 1), 128) * itemsize


def _step_vmem_bytes(tbq, d, b, p):
    bp = b * p
    per_step = (_block_bytes(tbq, d, 4)          # textual features
                + _block_bytes(tbq, 1, 4)        # textual mask
                + _block_bytes(tbq, bp, 4)       # concepts logits
                + _block_bytes(tbq, bp, 1)       # concepts mask (int8)
                + 3 * _block_bytes(tbq, bp, 4))  # three outputs
    invariant = _block_bytes(bp, d, 4) + _block_bytes(1, bp, 4)
    # Everything (including the grid-invariant visual blocks, which are only DMA'd
    # once but still get two buffers) is double-buffered by the pipeline.
    return 2 * (per_step + invariant)


def _vmem_capacity_bytes():
    try:
        return int(pltpu.get_tpu_info().vmem_capacity_bytes)
    except Exception:
        return 64 * 1024 * 1024        # conservative fallback (v7x per-TensorCore)


def _vmem_plan(b, q, p, d):
    """Pick TB (text-batches per grid step) and vmem_limit_bytes, per generation."""
    cap = _vmem_capacity_bytes()
    two_core = cap <= 96 * 2**20       # v7x: 64 MiB/TC & 2 TCs; v5e/v6e: 128 MiB, 1 TC
    budget = int(0.70 * cap)

    # tb must divide b; the block's sublane extent tb*q must be a packed-tile multiple
    # (32 covers int8) unless the block spans the whole array (tb == b).
    valid = [tb for tb in range(1, b + 1)
             if b % tb == 0 and (tb == b or (tb * q) % 32 == 0)]
    fitting = [tb for tb in valid if _step_vmem_bytes(tb * q, d, b, p) <= budget]

    if not fitting:
        tb = min(valid)
    elif two_core:
        multi = [t for t in fitting if b // t >= 2]   # keep >=2 steps for the 2 TCs
        tb = max(multi) if multi else max(fitting)
    else:
        tb = max(fitting)                             # single TC: biggest fitting tile

    # Headroom for the kernel's live (tb*q, b*p) f32 temporaries on top of the blocks.
    need = _step_vmem_bytes(tb * q, d, b, p) + 6 * _block_bytes(tb * q, b * p, 4)
    limit_cap = (48 if two_core else 100) * 2**20
    vmem_limit = int(min(max(need, 32 * 2**20), limit_cap))
    return tb, vmem_limit


# --------------------------------------------------------------------------- #
# Wrapper
# --------------------------------------------------------------------------- #
def similarity_prediction(visual, textual, concepts, omega=0.5):
    visual_feat, visual_mask = visual          # (b, p, d), (b, p) bool
    textual_feat, textual_mask = textual       # (b, q, d), (b, q) bool
    concepts_pred, concepts_mask = concepts    # (b, q, b, p), (b, q, b, p) bool

    b, q, d = textual_feat.shape
    p = visual_feat.shape[1]
    bq, bp = b * q, b * p

    # --- cheap glue (plain JAX): normalize once, fold to lane/sublane-dense 2-D ----
    tf = textual_feat.astype(jnp.float32)
    vf = visual_feat.astype(jnp.float32)
    tn = (tf / jnp.maximum(jnp.linalg.norm(tf, axis=-1, keepdims=True), COS_EPS)
          ).reshape(bq, d)
    vn = (vf / jnp.maximum(jnp.linalg.norm(vf, axis=-1, keepdims=True), COS_EPS)
          ).reshape(bp, d)
    t_mask_in = textual_mask.astype(jnp.float32).reshape(bq, 1)
    v_mask_in = visual_mask.astype(jnp.float32).reshape(1, bp)
    c_pred_in = concepts_pred.astype(jnp.float32).reshape(bq, bp)   # contiguous: free
    c_mask_in = concepts_mask.astype(jnp.int8).reshape(bq, bp)      # 4x less HBM

    # --- tiling --------------------------------------------------------------------
    tb, vmem_limit = _vmem_plan(b, q, p, d)
    tbq = tb * q
    grid = (b // tb,)

    kernel = functools.partial(similarity_kernel, omega=float(omega),
                               num_vb=b, num_prop=p)

    out_shape = (
        jax.ShapeDtypeStruct((bq, bp), jnp.float32),   # scores
        jax.ShapeDtypeStruct((bq, bp), jnp.float32),   # multimodal_pred
        jax.ShapeDtypeStruct((bq, bp), jnp.float32),   # concepts_pred (post softmax)
    )
    out_spec = lambda: pl.BlockSpec((tbq, bp), lambda i: (i, 0))

    scores, mm_pred, cp_pred = pl.pallas_call(
        kernel,
        out_shape=out_shape,
        grid_spec=pltpu.PrefetchScalarGridSpec(
            num_scalar_prefetch=0,
            grid=grid,                                  # blocks of TB text-batches
            in_specs=[
                pl.BlockSpec((tbq, d), lambda i: (i, 0)),   # textual feat (normalized)
                pl.BlockSpec((bp, d), lambda i: (0, 0)),    # visual feat (invariant)
                pl.BlockSpec((tbq, 1), lambda i: (i, 0)),   # textual mask
                pl.BlockSpec((1, bp), lambda i: (0, 0)),    # visual mask (invariant)
                pl.BlockSpec((tbq, bp), lambda i: (i, 0)),  # concepts logits
                pl.BlockSpec((tbq, bp), lambda i: (i, 0)),  # concepts mask (int8)
            ],
            out_specs=[out_spec(), out_spec(), out_spec()],
        ),
        compiler_params=pltpu.CompilerParams(
            dimension_semantics=("parallel",),
            vmem_limit_bytes=vmem_limit,
        ),
    )(tn, vn, t_mask_in, v_mask_in, c_pred_in, c_mask_in)

    # Contiguous reshapes back to the PyTorch [b, q, b, p] layout (free).
    scores = scores.reshape(b, q, b, p)
    mm_pred = mm_pred.reshape(b, q, b, p)
    cp_pred = cp_pred.reshape(b, q, b, p)
    return scores, (mm_pred, cp_pred)


# --------------------------------------------------------------------------- #
# Pure-JAX reference (matches the PyTorch forward)
# --------------------------------------------------------------------------- #
def similarity_prediction_ref(visual, textual, concepts, omega=0.5):
    visual_feat, visual_mask = visual
    textual_feat, textual_mask = textual
    concepts_pred, concepts_mask = concepts

    tn = textual_feat / jnp.maximum(
        jnp.linalg.norm(textual_feat, axis=-1, keepdims=True), COS_EPS)
    vn = visual_feat / jnp.maximum(
        jnp.linalg.norm(visual_feat, axis=-1, keepdims=True), COS_EPS)
    sim = jnp.einsum("ijd,kld->ijkl", tn, vn)                      # (b, q, b, p)

    mm_mask = textual_mask[:, :, None, None] & visual_mask[None, None, :, :]
    mm_pred = jax.nn.softmax(jnp.where(mm_mask, sim, NEG_INF), axis=-1)
    cp_pred = jax.nn.softmax(jnp.where(concepts_mask, concepts_pred, NEG_INF), axis=-1)

    scores = omega * mm_pred + (1 - omega) * cp_pred
    scores = jnp.where(mm_mask & concepts_mask, scores, 0.0)
    return scores, (mm_pred, cp_pred)


if __name__ == "__main__":
    b, q, p, d = 2, 8, 16, 32
    omega = 0.5

    key = jax.random.PRNGKey(0)
    k0, k1, k2, k3, k4, k5 = jax.random.split(key, 6)
    visual_feat = jax.random.normal(k0, (b, p, d), jnp.float32)
    textual_feat = jax.random.normal(k1, (b, q, d), jnp.float32)
    visual_mask = jax.random.bernoulli(k2, 0.8, (b, p))
    textual_mask = jax.random.bernoulli(k3, 0.8, (b, q))
    concepts_pred = jax.random.normal(k4, (b, q, b, p), jnp.float32)
    concepts_mask = jax.random.bernoulli(k5, 0.8, (b, q, b, p))

    visual = (visual_feat, visual_mask)
    textual = (textual_feat, textual_mask)
    concepts = (concepts_pred, concepts_mask)

    scores, (mm_pred, cp_pred) = similarity_prediction(visual, textual, concepts, omega)
    jax.block_until_ready((scores, mm_pred, cp_pred))

    scores_r, (mm_r, cp_r) = similarity_prediction_ref(visual, textual, concepts, omega)
    assert scores.shape == (b, q, b, p)
    assert jnp.allclose(scores, scores_r, atol=1e-5, rtol=1e-5)
    assert jnp.allclose(mm_pred, mm_r, atol=1e-5, rtol=1e-5)
    assert jnp.allclose(cp_pred, cp_r, atol=1e-5, rtol=1e-5)

    print("KERNEL_OK")
</pallas_src>

<mosaic_0001>
module attributes {stable_mosaic.version = 11 : i64} {
  func.func @similarity_kernel(%arg0: i32, %arg1: memref<16x32xf32, #tpu.memory_space<vmem>>, %arg2: memref<32x32xf32, #tpu.memory_space<vmem>>, %arg3: memref<16x1xf32, #tpu.memory_space<vmem>>, %arg4: memref<1x32xf32, #tpu.memory_space<vmem>>, %arg5: memref<16x32xf32, #tpu.memory_space<vmem>>, %arg6: memref<16x32xi8, #tpu.memory_space<vmem>>, %arg7: memref<16x32xf32, #tpu.memory_space<vmem>>, %arg8: memref<16x32xf32, #tpu.memory_space<vmem>>, %arg9: memref<16x32xf32, #tpu.memory_space<vmem>>) attributes {dimension_semantics = [#tpu.dimension_semantics<parallel>], iteration_bounds = array<i64: 1>, scalar_prefetch = 0 : i64, scratch_operands = 0 : i64, tpu.core_type = #tpu.core_type<tc>, window_params = [{transform_indices = @transform_0, window_bounds = array<i64: 16, 32>}, {pipeline_mode = #tpu.pipeline_mode<synchronous>, transform_indices = @transform_1, window_bounds = array<i64: 32, 32>}, {transform_indices = @transform_2, window_bounds = array<i64: 16, 1>}, {pipeline_mode = #tpu.pipeline_mode<synchronous>, transform_indices = @transform_3, window_bounds = array<i64: 1, 32>}, {transform_indices = @transform_4, window_bounds = array<i64: 16, 32>}, {transform_indices = @transform_5, window_bounds = array<i64: 16, 32>}, {transform_indices = @transform_6, window_bounds = array<i64: 16, 32>}, {transform_indices = @transform_7, window_bounds = array<i64: 16, 32>}, {transform_indices = @transform_8, window_bounds = array<i64: 16, 32>}]} {
    %c0 = arith.constant 0 : index
    %c0_0 = arith.constant 0 : index
    %0 = vector.load %arg1[%c0, %c0_0] : memref<16x32xf32, #tpu.memory_space<vmem>>, vector<16x32xf32>
    %c0_1 = arith.constant 0 : index
    %c0_2 = arith.constant 0 : index
    %1 = vector.load %arg2[%c0_1, %c0_2] : memref<32x32xf32, #tpu.memory_space<vmem>>, vector<32x32xf32>
    %cst = arith.constant dense<0.000000e+00> : vector<16x32xf32>
    %2 = tpu.matmul %0, %1, %cst {dimension_numbers = #tpu.dot_dimension_numbers<[1], [1], [0], [0], [0, 0, 1, 0], [], []>} : vector<16x32xf32>, vector<32x32xf32>, vector<16x32xf32> -> vector<16x32xf32>
    %c0_3 = arith.constant 0 : index
    %c0_4 = arith.constant 0 : index
    %3 = vector.load %arg3[%c0_3, %c0_4] : memref<16x1xf32, #tpu.memory_space<vmem>>, vector<16x1xf32>
    %c0_5 = arith.constant 0 : index
    %c0_6 = arith.constant 0 : index
    %4 = vector.load %arg4[%c0_5, %c0_6] : memref<1x32xf32, #tpu.memory_space<vmem>>, vector<1x32xf32>
    %5 = vector.broadcast %3 : vector<16x1xf32> to vector<16x32xf32>
    %6 = vector.broadcast %4 : vector<1x32xf32> to vector<16x32xf32>
    %7 = arith.mulf %5, %6 : vector<16x32xf32>
    %cst_7 = arith.constant 0.000000e+00 : f32
    %8 = vector.broadcast %cst_7 : f32 to vector<16x32xf32>
    %9 = arith.cmpf ogt, %7, %8 : vector<16x32xf32>
    %c0_8 = arith.constant 0 : index
    %c0_9 = arith.constant 0 : index
    %10 = vector.load %arg6[%c0_8, %c0_9] : memref<16x32xi8, #tpu.memory_space<vmem>>, vector<16x32xi8>
    %c0_i8 = arith.constant 0 : i8
    %11 = vector.broadcast %c0_i8 : i8 to vector<16x32xi8>
    %12 = arith.cmpi ne, %10, %11 : vector<16x32xi8>
    %13 = tpu.iota {dimensions = array<i32: 0>} : vector<32x2xi32>
    %14 = tpu.iota {dimensions = array<i32: 1>} : vector<32x2xi32>
    %c16_i32 = arith.constant 16 : i32
    %15 = vector.broadcast %c16_i32 : i32 to vector<32x2xi32>
    %16 = arith.muli %14, %15 : vector<32x2xi32>
    %17 = arith.cmpi sge, %13, %16 : vector<32x2xi32>
    %c16_i32_10 = arith.constant 16 : i32
    %18 = vector.broadcast %c16_i32_10 : i32 to vector<32x2xi32>
    %19 = arith.addi %16, %18 : vector<32x2xi32>
    %20 = arith.cmpi slt, %13, %19 : vector<32x2xi32>
    %21 = arith.andi %17, %20 : vector<32x2xi1>
    %22 = arith.extui %21 : vector<32x2xi1> to vector<32x2xi32>
    %23 = arith.sitofp %22 : vector<32x2xi32> to vector<32x2xf32>
    %cst_11 = arith.constant -1.000000e+08 : f32
    %24 = vector.broadcast %cst_11 : f32 to vector<16x32xf32>
    %25 = arith.select %9, %2, %24 : vector<16x32xi1>, vector<16x32xf32>
    %cst_12 = arith.constant dense<0xFF800000> : vector<16xf32>
    %26 = vector.multi_reduction <maximumf>, %25, %cst_12 [1] : vector<16x32xf32> to vector<16xf32>
    %27 = vector.shape_cast %26 : vector<16xf32> to vector<16x1xf32>
    %28 = vector.broadcast %27 : vector<16x1xf32> to vector<16x32xf32>
    %29 = arith.subf %25, %28 : vector<16x32xf32>
    %30 = math.exp %29 : vector<16x32xf32>
    %cst_13 = arith.constant 0.000000e+00 : f32
    %31 = vector.broadcast %cst_13 : f32 to vector<16x32xf32>
    %32 = arith.select %9, %30, %31 : vector<16x32xi1>, vector<16x32xf32>
    %cst_14 = arith.constant dense<0.000000e+00> : vector<16x2xf32>
    %33 = tpu.matmul %32, %23, %cst_14 {dimension_numbers = #tpu.dot_dimension_numbers<[1], [0], [0], [1], [0, 0, 1, 1], [], []>} : vector<16x32xf32>, vector<32x2xf32>, vector<16x2xf32> -> vector<16x2xf32>
    %cst_15 = arith.constant 0.000000e+00 : f32
    %34 = vector.broadcast %cst_15 : f32 to vector<16x2xf32>
    %35 = arith.cmpf ogt, %33, %34 : vector<16x2xf32>
    %cst_16 = arith.constant 1.000000e+00 : f32
    %36 = vector.broadcast %cst_16 : f32 to vector<16x2xf32>
    %37 = arith.select %35, %33, %36 : vector<16x2xi1>, vector<16x2xf32>
    %cst_17 = arith.constant 1.000000e+00 : f32
    %38 = vector.broadcast %cst_17 : f32 to vector<16x2xf32>
    %39 = arith.divf %38, %37 : vector<16x2xf32>
    %cst_18 = arith.constant 0.000000e+00 : f32
    %40 = vector.broadcast %cst_18 : f32 to vector<16x2xf32>
    %41 = arith.select %35, %39, %40 : vector<16x2xi1>, vector<16x2xf32>
    %cst_19 = arith.constant dense<0.000000e+00> : vector<16x32xf32>
    %42 = tpu.matmul %41, %23, %cst_19 {dimension_numbers = #tpu.dot_dimension_numbers<[1], [1], [0], [0], [0, 0, 1, 0], [], []>} : vector<16x2xf32>, vector<32x2xf32>, vector<16x32xf32> -> vector<16x32xf32>
    %cst_20 = arith.constant 0.000000e+00 : f32
    %43 = vector.broadcast %cst_20 : f32 to vector<16x32xf32>
    %44 = arith.cmpf ogt, %42, %43 : vector<16x32xf32>
    %45 = arith.mulf %32, %42 : vector<16x32xf32>
    %cst_21 = arith.constant 6.250000e-02 : f32
    %46 = vector.broadcast %cst_21 : f32 to vector<16x32xf32>
    %47 = arith.select %44, %45, %46 : vector<16x32xi1>, vector<16x32xf32>
    %c0_22 = arith.constant 0 : index
    %c0_23 = arith.constant 0 : index
    %48 = vector.load %arg5[%c0_22, %c0_23] : memref<16x32xf32, #tpu.memory_space<vmem>>, vector<16x32xf32>
    %cst_24 = arith.constant -1.000000e+08 : f32
    %49 = vector.broadcast %cst_24 : f32 to vector<16x32xf32>
    %50 = arith.select %12, %48, %49 : vector<16x32xi1>, vector<16x32xf32>
    %cst_25 = arith.constant dense<0xFF800000> : vector<16xf32>
    %51 = vector.multi_reduction <maximumf>, %50, %cst_25 [1] : vector<16x32xf32> to vector<16xf32>
    %52 = vector.shape_cast %51 : vector<16xf32> to vector<16x1xf32>
    %53 = vector.broadcast %52 : vector<16x1xf32> to vector<16x32xf32>
    %54 = arith.subf %50, %53 : vector<16x32xf32>
    %55 = math.exp %54 : vector<16x32xf32>
    %cst_26 = arith.constant 0.000000e+00 : f32
    %56 = vector.broadcast %cst_26 : f32 to vector<16x32xf32>
    %57 = arith.select %12, %55, %56 : vector<16x32xi1>, vector<16x32xf32>
    %cst_27 = arith.constant dense<0.000000e+00> : vector<16x2xf32>
    %58 = tpu.matmul %57, %23, %cst_27 {dimension_numbers = #tpu.dot_dimension_numbers<[1], [0], [0], [1], [0, 0, 1, 1], [], []>} : vector<16x32xf32>, vector<32x2xf32>, vector<16x2xf32> -> vector<16x2xf32>
    %cst_28 = arith.constant 0.000000e+00 : f32
    %59 = vector.broadcast %cst_28 : f32 to vector<16x2xf32>
    %60 = arith.cmpf ogt, %58, %59 : vector<16x2xf32>
    %cst_29 = arith.constant 1.000000e+00 : f32
    %61 = vector.broadcast %cst_29 : f32 to vector<16x2xf32>
    %62 = arith.select %60, %58, %61 : vector<16x2xi1>, vector<16x2xf32>
    %cst_30 = arith.constant 1.000000e+00 : f32
    %63 = vector.broadcast %cst_30 : f32 to vector<16x2xf32>
    %64 = arith.divf %63, %62 : vector<16x2xf32>
    %cst_31 = arith.constant 0.000000e+00 : f32
    %65 = vector.broadcast %cst_31 : f32 to vector<16x2xf32>
    %66 = arith.select %60, %64, %65 : vector<16x2xi1>, vector<16x2xf32>
    %cst_32 = arith.constant dense<0.000000e+00> : vector<16x32xf32>
    %67 = tpu.matmul %66, %23, %cst_32 {dimension_numbers = #tpu.dot_dimension_numbers<[1], [1], [0], [0], [0, 0, 1, 0], [], []>} : vector<16x2xf32>, vector<32x2xf32>, vector<16x32xf32> -> vector<16x32xf32>
    %cst_33 = arith.constant 0.000000e+00 : f32
    %68 = vector.broadcast %cst_33 : f32 to vector<16x32xf32>
    %69 = arith.cmpf ogt, %67, %68 : vector<16x32xf32>
    %70 = arith.mulf %57, %67 : vector<16x32xf32>
    %cst_34 = arith.constant 6.250000e-02 : f32
    %71 = vector.broadcast %cst_34 : f32 to vector<16x32xf32>
    %72 = arith.select %69, %70, %71 : vector<16x32xi1>, vector<16x32xf32>
    %cst_35 = arith.constant 5.000000e-01 : f32
    %73 = vector.broadcast %cst_35 : f32 to vector<16x32xf32>
    %74 = arith.mulf %73, %47 : vector<16x32xf32>
    %cst_36 = arith.constant 5.000000e-01 : f32
    %75 = vector.broadcast %cst_36 : f32 to vector<16x32xf32>
    %76 = arith.mulf %75, %72 : vector<16x32xf32>
    %77 = arith.addf %74, %76 : vector<16x32xf32>
    %78 = arith.andi %9, %12 : vector<16x32xi1>
    %cst_37 = arith.constant 0.000000e+00 : f32
    %79 = vector.broadcast %cst_37 : f32 to vector<16x32xf32>
    %80 = arith.select %78, %77, %79 : vector<16x32xi1>, vector<16x32xf32>
    %c0_38 = arith.constant 0 : index
    %c0_39 = arith.constant 0 : index
    %81 = vector.load %arg7[%c0_38, %c0_39] : memref<16x32xf32, #tpu.memory_space<vmem>>, vector<16x32xf32>
    tpu.vector_store %arg7[%c0_38, %c0_39], %80 {strides = array<i32>} : memref<16x32xf32, #tpu.memory_space<vmem>>, vector<16x32xf32>,
    %c0_40 = arith.constant 0 : index
    %c0_41 = arith.constant 0 : index
    %82 = vector.load %arg8[%c0_40, %c0_41] : memref<16x32xf32, #tpu.memory_space<vmem>>, vector<16x32xf32>
    tpu.vector_store %arg8[%c0_40, %c0_41], %47 {strides = array<i32>} : memref<16x32xf32, #tpu.memory_space<vmem>>, vector<16x32xf32>,
    %c0_42 = arith.constant 0 : index
    %c0_43 = arith.constant 0 : index
    %83 = vector.load %arg9[%c0_42, %c0_43] : memref<16x32xf32, #tpu.memory_space<vmem>>, vector<16x32xf32>
    tpu.vector_store %arg9[%c0_42, %c0_43], %72 {strides = array<i32>} : memref<16x32xf32, #tpu.memory_space<vmem>>, vector<16x32xf32>,
    return
  }
  func.func @transform_0(%arg0: i32) -> (i32, i32) {
    %c0_i32 = arith.constant 0 : i32
    %c0_i32_0 = arith.constant 0 : i32
    return %arg0, %c0_i32 : i32, i32
  }
  func.func @transform_1(%arg0: i32) -> (i32, i32) {
    %c0_i32 = arith.constant 0 : i32
    %c0_i32_0 = arith.constant 0 : i32
    %c0_i32_1 = arith.constant 0 : i32
    return %c0_i32, %c0_i32_0 : i32, i32
  }
  func.func @transform_2(%arg0: i32) -> (i32, i32) {
    %c0_i32 = arith.constant 0 : i32
    %c0_i32_0 = arith.constant 0 : i32
    return %arg0, %c0_i32 : i32, i32
  }
  func.func @transform_3(%arg0: i32) -> (i32, i32) {
    %c0_i32 = arith.constant 0 : i32
    %c0_i32_0 = arith.constant 0 : i32
    %c0_i32_1 = arith.constant 0 : i32
    return %c0_i32, %c0_i32_0 : i32, i32
  }
  func.func @transform_4(%arg0: i32) -> (i32, i32) {
    %c0_i32 = arith.constant 0 : i32
    %c0_i32_0 = arith.constant 0 : i32
    return %arg0, %c0_i32 : i32, i32
  }
  func.func @transform_5(%arg0: i32) -> (i32, i32) {
    %c0_i32 = arith.constant 0 : i32
    %c0_i32_0 = arith.constant 0 : i32
    return %arg0, %c0_i32 : i32, i32
  }
  func.func @transform_6(%arg0: i32) -> (i32, i32) {
    %c0_i32 = arith.constant 0 : i32
    %c0_i32_0 = arith.constant 0 : i32
    return %arg0, %c0_i32 : i32, i32
  }
  func.func @transform_7(%arg0: i32) -> (i32, i32) {
    %c0_i32 = arith.constant 0 : i32
    %c0_i32_0 = arith.constant 0 : i32
    return %arg0, %c0_i32 : i32, i32
  }
  func.func @transform_8(%arg0: i32) -> (i32, i32) {
    %c0_i32 = arith.constant 0 : i32
    %c0_i32_0 = arith.constant 0 : i32
    return %arg0, %c0_i32 : i32, i32
  }
}

</mosaic_0001>

<bundles_post_ra>
// kernel: tpu_custom_call.1
= control target key start
LH: loop header
LB: loop body
LE: loop exit
PB: predicated region body
PF: predicated region fallthrough
CT: control target
= control target key end

     0   :  { %14 = vsyncpa [#allocation3], 0  ;;  %s967_s0 = inlined_call_operand.vmem [shape: f32[16,32], index: 0, kind: input, shape index: {}]   ;;  %s968_s1 = inlined_call_operand.hbm [shape: f32[32,32], index: 1, kind: input, shape index: {}]   ;;  %s969_s2 = inlined_call_operand.vmem [shape: f32[16,1], index: 2, kind: input, shape index: {}]   ;;  %s970_s3 = inlined_call_operand.vmem [shape: f32[1,32], index: 3, kind: input, shape index: {}]   ;;  %s971_s4 = inlined_call_operand.hbm [shape: f32[16,32], index: 4, kind: input, shape index: {}]   ;;  %s972_s5 = inlined_call_operand.hbm [shape: s8[16,32], index: 5, kind: input, shape index: {}]   ;;  %s973_s6 = inlined_call_operand.hbm [shape: f32[16,32], index: 6, kind: output, shape index: {0}]   ;;  %s974_s7 = inlined_call_operand.hbm [shape: f32[16,32], index: 7, kind: output, shape index: {1}]   ;;  %s975_s8 = inlined_call_operand.hbm [shape: f32[16,32], index: 8, kind: output, shape index: {2}]  }
   0x1   :  { %15 = vsyncpa [#allocation6], 0 }
   0x2   :  { %16 = vsyncpa [#allocation4], 0 }
   0x3   :  { %17 = vsyncpa [#allocation10], 0  ;;  %s41_s29 = sshll.u32 %s971_s4, 4  ;;  %s723_s30 = smov [#allocation5]   ;;  %s42_s29 = int_to_ptr.hbm [resolvable:$true] %s41_s29 }
   0x4   :  { %s43_s9 = sshll.u32 %s723_s30, 4  ;;  %s24_s12 = sshll.u32 %s968_s1, 4  ;;  %s44_s9 = int_to_ptr.vmem [resolvable:$true] %s43_s9  ;;  %s25_s12 = int_to_ptr.hbm [resolvable:$true] %s24_s12 }
   0x5   :  { %s724_s13 = smov 128   ;;  %s725_s14 = smov 8  }
   0x6   :  { %49 = dma.hbm_to_vmem [thread:$0]  %s42_s29, 256, %s44_s9, [#allocation6], %s724_s13, %s724_s13, %s725_s14  }
   0x7   :  { %s726_s15 = smov [#allocation2]   ;;  %s54_s4 = sshll.u32 %s972_s5, 4  ;;  %s55_s4 = int_to_ptr.hbm [resolvable:$true] %s54_s4 }
   0x8   :  { %s26_s16 = sshll.u32 %s726_s15, 4  ;;  %s727_s1 = smov [#allocation7]   ;;  %s27_s16 = int_to_ptr.vmem [resolvable:$true] %s26_s16 }
   0x9   :  { %32 = dma.hbm_to_vmem [thread:$0]  %s25_s12, 512, %s27_s16, [#allocation3], %s724_s13, %s724_s13, %s725_s14  }
   0xa   :  { %s56_s19 = sshll.u32 %s727_s1, 4  ;;  %s728_s20 = smov 32   ;;  %s57_s19 = int_to_ptr.vmem [resolvable:$true] %s56_s19 }
   0xb   :  { %s729_s21 = smov 2  }
   0xc   :  { %62 = dma.hbm_to_vmem [thread:$0]  %s55_s4, 64, %s57_s19, [#allocation6], %s728_s20, %s728_s20, %s729_s21  }
   0xd   :  { %715 = dma.done.wait [#allocation3], 512  }
   0xe   :  { %716 = vsyncadd [#allocation3], 4294966784 }
   0xf   :  { %717 = dma.done.wait [#allocation6], 320  }
  0x10   :  { %718 = vsyncadd [#allocation6], 4294966976  ;;  %v730_v0 = vmov 0   ;;  %vm83_vm0 = vcmask 261120   ;;  %v82_v1 = vld [vmem:[#allocation2 + $0x18] sm:$0xff]  ;;  %v81_v3 = vld [vmem:[#allocation2 + $0x10] sm:$0xff]  ;;  %v149_v23 = vlaneseq }
  0x11   :  { %553 = vset.pattern.permute.xlu0 %v730_v0  ;;  %v145_v2 = vld [vmem:[#allocation7] sm:$0x3]  ;;  %502 = vmatpush.xpose.msk.msra.mxu0 %vm83_vm0, %v82_v1  ;;  %v146_v5 = vld [vmem:[#allocation7 + $0x2] sm:$0x3]  ;;  %v125_v6 = vld [vmem:[%s969_s2] sm:$0xff]  ;;  %v731_v31 = vmov 1.0  }
  0x12   :  { %vm147_vm1 = vnez %v145_v2  ;;  %v307_v7 = vld [vmem:[#allocation5] sm:$0xff]  ;;  %vm148_vm2 = vnez %v146_v5  ;;  %130 = vperm.xlu0 %553, %v125_v6   ;;  %v308_v11 = vld [vmem:[#allocation5 + $0x8] sm:$0xff]  ;;  %v155_v24 = vand.u32 127, %v149_v23  ;;  %v150_v25 = vshrl.u32 %v149_v23, 7  ;;  %s466_s10 = sshll.u32 %s974_s7, 4  ;;  %s734_s11 = smov [#allocation11]   ;;  %s467_s10 = int_to_ptr.hbm [resolvable:$true] %s466_s10 }
  0x13   :  { %v309_v4 = vsel %vm147_vm1, 16843009, %v730_v0  ;;  %v310_v9 = vsel %vm148_vm2, 16843009, %v730_v0  ;;  %v80_v14 = vld [vmem:[#allocation2 + $0x8] sm:$0xff]  ;;  %v79_v20 = vld [vmem:[#allocation2] sm:$0xff] }
  0x14   :  { %v311_v8 = vunpack.c.0.s8 %v309_v4  ;;  %v312_v12 = vunpack.c.0.s8 %v310_v9  ;;  %v126_v18 = vld [vmem:[%s969_s2 + $0x8] sm:$0xff]  ;;  %v77_v21 = vld [vmem:[%s967_s0] sm:$0xff]  ;;  %v156_v26 = vmul.u32 16, %v155_v24  ;;  %v153_v27 = vadd.s32 24, %v150_v25  ;;  %s477_s12 = sshll.u32 %s734_s11, 4  ;;  %s479_s17 = sshll.u32 %s975_s8, 4  ;;  %s478_s12 = int_to_ptr.vmem [resolvable:$true] %s477_s12  ;;  %s480_s17 = int_to_ptr.hbm [resolvable:$true] %s479_s17 }
  0x15   :  { %503 = vmatpush.xpose.msk.msra.mxu0 %vm83_vm0, %v81_v3  ;;  %v78_v22 = vld [vmem:[%s967_s0 + $0x8] sm:$0xff]  ;;  %v152_v29 = vadd.s32 16, %v150_v25  ;;  %v151_v32 = vadd.s32 8, %v150_v25  ;;  %v554_v42 = vld [vmem:[%s970_s3] ss:$0 sm:$0xff]  ;;  %v732_v57 = vmov 0.0  }
  0x16   :  { %vm801_vm3 = vcmp.ne.s32.totalorder %v311_v8, 0  ;;  %vm808_vm4 = vcmp.ne.s32.totalorder %v312_v12, 0  ;;  %v161_v28 = vadd.s32 16, %v156_v26  ;;  %vm160_vm5 = vcmp.ge.s32.totalorder %v153_v27, %v156_v26  ;;  %s733_s3 = smov [#allocation9]   ;;  %s735_s7 = smov [#allocation8]  }
  0x17   :  { %v315_v13 = vsel %vm801_vm3, %v307_v7, -1e+08  ;;  %v316_v17 = vsel %vm808_vm4, %v308_v11, -1e+08  ;;  %vm159_vm8 = vcmp.ge.s32.totalorder %v152_v29, %v156_v26  ;;  %vm157_vm11 = vcmp.ge.s32.totalorder %v150_v25, %v156_v26  ;;  %s464_s29 = sshll.u32 %s733_s3, 4  ;;  %s451_s18 = sshll.u32 %s735_s7, 4  ;;  %s465_s29 = int_to_ptr.vmem [resolvable:$true] %s464_s29  ;;  %s452_s18 = int_to_ptr.vmem [resolvable:$true] %s451_s18 }
  0x18   :  { %v317_v15 = vsel %vm83_vm0, %v315_v13, -inf  ;;  %v320_v19 = vsel %vm83_vm0, %v316_v17, -inf  ;;  %vm165_vm6 = vcmp.lt.s32.totalorder %v153_v27, %v161_v28  ;;  %vm164_vm9 = vcmp.lt.s32.totalorder %v152_v29, %v161_v28  ;;  %s453_s19 = sshll.u32 %s973_s6, 4  ;;  %s454_s19 = int_to_ptr.hbm [resolvable:$true] %s453_s19 }
  0x19   :  { %318 = vmax.xlane.f32.xlu1 %v317_v15  ;;  %504 = vmatpush.xpose.msk.msra.mxu0 %vm83_vm0, %v80_v14  ;;  %vm828_vm7 = vmand %vm160_vm5, %vm165_vm6  ;;  %vm162_vm12 = vcmp.lt.s32.totalorder %v150_v25, %v161_v28  ;;  %vm158_vm13 = vcmp.ge.s32.totalorder %v151_v32, %v156_v26  ;;  %vm163_vm14 = vcmp.lt.s32.totalorder %v151_v32, %v161_v28  ;;  %vm259_vm6 = vcmask 15360  }
  0x1a   :  { %321 = vmax.xlane.f32.xlu2 %v320_v19  ;;  %135 = vperm.xlu0 %553, %v126_v18   ;;  %vm836_vm10 = vmand %vm159_vm8, %vm164_vm9  ;;  %v511_v58 = vsel %vm828_vm7, 1.0, %v732_v57 }
  0x1b   :  { %524 = vmatpush.msk.msra.mxu3 %vm828_vm7, %v731_v31  ;;  %512 = vmatpush.msk.msra.mxu1 %vm828_vm7, %v731_v31  ;;  %vm842_vm15 = vmand %vm157_vm11, %vm162_vm12  ;;  %v510_v59 = vsel %vm836_vm10, 1.0, %v732_v57 }
  0x1c   :  { %vm848_vm1 = vmand %vm158_vm13, %vm163_vm14  ;;  %518 = vmatpush.xpose.msk.msra.mxu2 %vm259_vm6, %v511_v58  ;;  %v508_v61 = vsel %vm842_vm15, 1.0, %v732_v57 }
  0x1d   :  { %505 = vmatpush.xpose.msk.msra.mxu0 %vm83_vm0, %v79_v20  ;;  %525 = vmatpush.msk.msra.mxu3 %vm836_vm10, %v731_v31  ;;  %v509_v60 = vsel %vm848_vm1, 1.0, %v732_v57 }
  0x1e   :  { %513 = vmatpush.msk.msra.mxu1 %vm836_vm10, %v731_v31 }
  0x1f   :  { %526 = vmatpush.msk.msra.mxu3 %vm848_vm1, %v731_v31 }
  0x20   :  { %506 = vmatmul.msk.f32.vlgmr.msra.gmra.mxu0 %vm83_vm0, %v77_v21  ;;  %514 = vmatpush.msk.msra.mxu1 %vm848_vm1, %v731_v31 }
  0x21   :  { %527 = vmatpush.msk.msra.mxu3 %vm842_vm15, %v731_v31  ;;  %519 = vmatpush.xpose.msk.msra.mxu2 %vm259_vm6, %v510_v59 }
  0x22   :  { %515 = vmatpush.msk.msra.mxu1 %vm842_vm15, %v731_v31 }
  0x23   :  { %536 = vmatpush.xpose.msk.msrb.mxu3 %vm259_vm6, %v511_v58 }
  0x24   :  { %530 = vmatpush.xpose.msk.msrb.mxu1 %vm259_vm6, %v511_v58 }
  0x25   :  { %520 = vmatpush.xpose.msk.msra.mxu2 %vm259_vm6, %v509_v60 }
  0x27   :  { %537 = vmatpush.xpose.msk.msrb.mxu3 %vm259_vm6, %v510_v59 }
  0x28   :  { %507 = vmatmul.msk.f32.gmra.mxu0 %vm83_vm0, %v78_v22  ;;  %531 = vmatpush.xpose.msk.msrb.mxu1 %vm259_vm6, %v510_v59 }
  0x29   :  { %521 = vmatpush.xpose.msk.msra.mxu2 %vm259_vm6, %v508_v61 }
  0x2b   :  { %538 = vmatpush.xpose.msk.msrb.mxu3 %vm259_vm6, %v509_v60 }
  0x2c   :  { %532 = vmatpush.xpose.msk.msrb.mxu1 %vm259_vm6, %v509_v60 }
  0x2f   :  { %539 = vmatpush.xpose.msk.msrb.mxu3 %vm259_vm6, %v508_v61 }
  0x30   :  { %533 = vmatpush.xpose.msk.msrb.mxu1 %vm259_vm6, %v508_v61 }
  0x84   :  { %v131_v43 = vpop.permute.xlu0 %130 }
  0x85   :  { %v863_v45 = vmul.f32 %v554_v42, %v131_v43 }
  0x87   :  { %vm143_vm2 = vcmp.gt.f32.partialorder %v863_v45, 0.0 }
  0x8c   :  { %v319_v36 = vpop.xlane.xlu1 %318  ;;  %v136_v50 = vpop.permute.xlu0 %135 }
  0x8d   :  { %v323_v37 = vsub.f32 %v315_v13, %v319_v36  ;;  %v322_v38 = vpop.xlane.xlu2 %321  ;;  %v881_v53 = vmul.f32 %v554_v42, %v136_v50 }
  0x8e   :  { %v324_v40 = vsub.f32 %v316_v17, %v322_v38 }
  0x8f   :  { %v325_v39 = vmul.f32 1.442695, %v323_v37  ;;  %vm144_vm5 = vcmp.gt.f32.partialorder %v881_v53, 0.0 }
  0x90   :  { %v327_v41 = vmul.f32 1.442695, %v324_v40 }
  0x91   :  { %555 = vpow2.f32 %v325_v39 }
  0x92   :  { %557 = vpow2.f32 %v327_v41 }
  0x97   :  { %v556_v44 = vpop.eup %555 }
  0x98   :  { %v867_v46 = vsel %vm801_vm3, %v556_v44, 0.0  ;;  %v558_v47 = vpop.eup %557 }
  0x99   :  { %528 = vmatmul.msk.f32.vlgmr.msra.gmra.mxu3 %vm83_vm0, %v867_v46  ;;  %v874_v49 = vsel %vm808_vm4, %v558_v47, 0.0 }
  0x9d   :  { %v119_v48 = vpop.f32.mrf.mxu0 }
  0x9e   :  { %v178_v51 = vsel %vm143_vm2, %v119_v48, -1e+08 }
  0x9f   :  { %v180_v52 = vsel %vm83_vm0, %v178_v51, -inf }
  0xa0   :  { %181 = vmax.xlane.f32.xlu1 %v180_v52 }
  0xa1   :  { %529 = vmatmul.msk.f32.gmra.mxu3 %vm83_vm0, %v874_v49 }
  0xa5   :  { %v122_v54 = vpop.f32.mrf.mxu0 }
  0xa6   :  { %v179_v55 = vsel %vm144_vm5, %v122_v54, -1e+08 }
  0xa7   :  { %v183_v56 = vsel %vm83_vm0, %v179_v55, -inf }
  0xa8   :  { %184 = vmax.xlane.f32.xlu2 %v183_v56 }
 0x113   :  { %v182_v62 = vpop.xlane.xlu1 %181 }
 0x114   :  { %v186_v63 = vsub.f32 %v178_v51, %v182_v62 }
 0x116   :  { %v188_v0 = vmul.f32 1.442695, %v186_v63 }
 0x118   :  { %559 = vpow2.f32 %v188_v0 }
 0x11b   :  { %v185_v2 = vpop.xlane.xlu2 %184 }
 0x11c   :  { %v354_v1 = vpop.f32.mrf.mxu3  ;;  %v187_v3 = vsub.f32 %v179_v55, %v185_v2 }
 0x11d   :  { %vm360_vm7 = vcmp.gt.f32.partialorder %v354_v1, 0.0 }
 0x11e   :  { %v362_v4 = vsel %vm360_vm7, %v354_v1, 1.0  ;;  %v560_v5 = vpop.eup %559  ;;  %v190_v6 = vmul.f32 1.442695, %v187_v3 }
 0x11f   :  { %561 = vrcp.f32 %v362_v4  ;;  %v910_v7 = vsel %vm143_vm2, %v560_v5, 0.0  ;;  %v375_v13 = vand.u32 2147483648, %v362_v4  ;;  %vm369_vm9 = vweird.f32 %v362_v4 }
 0x120   :  { %516 = vmatmul.msk.f32.vlgmr.msra.gmra.mxu1 %vm83_vm0, %v910_v7  ;;  %563 = vpow2.f32 %v190_v6  ;;  %v373_v17 = vand.u32 2147483647, %v362_v4 }
 0x121   :  { %v376_v20 = vor.u32 1.1754944e-38, %v375_v13 }
 0x122   :  { %vm374_vm12 = vcmp.eq.f32.partialorder %v373_v17, 8.507059e+37 }
 0x124   :  { %v357_v8 = vpop.f32.mrf.mxu3 }
 0x125   :  { %v562_v9 = vpop.eup %561  ;;  %vm361_vm8 = vcmp.gt.f32.partialorder %v357_v8, 0.0 }
 0x126   :  { %v365_v11 = vmul.f32 %v562_v9, %v362_v4  ;;  %v363_v12 = vsel %vm361_vm8, %v357_v8, 1.0  ;;  %v564_v14 = vpop.eup %563  ;;  %vm370_vm10 = vweird.f32 %v562_v9 }
 0x127   :  { %565 = vrcp.f32 %v363_v12  ;;  %v917_v18 = vsel %vm144_vm5, %v564_v14, 0.0  ;;  %vm371_vm11 = vmor %vm369_vm9, %vm370_vm10  ;;  %vm384_vm13 = vweird.f32 %v363_v12  ;;  %v390_v26 = vand.u32 2147483648, %v363_v12 }
 0x128   :  { %v366_v15 = vsub.f32 1.0, %v365_v11  ;;  %517 = vmatmul.msk.f32.gmra.mxu1 %vm83_vm0, %v917_v18  ;;  %v388_v29 = vand.u32 2147483647, %v363_v12 }
 0x129   :  { %v391_v31 = vor.u32 1.1754944e-38, %v390_v26 }
 0x12a   :  { %v367_v19 = vmul.f32 %v562_v9, %v366_v15  ;;  %vm389_vm1 = vcmp.eq.f32.partialorder %v388_v29, 8.507059e+37 }
 0x12c   :  { %v368_v21 = vadd.f32 %v562_v9, %v367_v19 }
 0x12d   :  { %v566_v22 = vpop.eup %565 }
 0x12e   :  { %v372_v23 = vsel %vm371_vm11, %v562_v9, %v368_v21  ;;  %v380_v24 = vmul.f32 %v566_v22, %v363_v12  ;;  %vm385_vm14 = vweird.f32 %v566_v22 }
 0x12f   :  { %v377_v25 = vsel %vm374_vm12, %v376_v20, %v372_v23  ;;  %vm386_vm15 = vmor %vm384_vm13, %vm385_vm14 }
 0x130   :  { %v394_v27 = vsel %vm360_vm7, %v377_v25, 0.0  ;;  %v381_v28 = vsub.f32 1.0, %v380_v24 }
 0x131   :  { %534 = vmatmul.msk.f32.vlgmr.msrb.gmra.mxu1 %vm259_vm6, %v394_v27 }
 0x132   :  { %v382_v30 = vmul.f32 %v566_v22, %v381_v28 }
 0x134   :  { %v383_v32 = vadd.f32 %v566_v22, %v382_v30 }
 0x136   :  { %v387_v33 = vsel %vm386_vm15, %v566_v22, %v383_v32 }
 0x137   :  { %v392_v34 = vsel %vm389_vm1, %v391_v31, %v387_v33 }
 0x138   :  { %v395_v35 = vsel %vm361_vm8, %v392_v34, 0.0 }
 0x139   :  { %535 = vmatmul.msk.f32.vlgmr.msrb.gmra.mxu3 %vm259_vm6, %v395_v35 }
 0x19d   :  { %v217_v36 = vpop.f32.mrf.mxu1 }
 0x19e   :  { %vm223_vm9 = vcmp.gt.f32.partialorder %v217_v36, 0.0 }
 0x19f   :  { %v225_v37 = vsel %vm223_vm9, %v217_v36, 1.0 }
 0x1a0   :  { %567 = vrcp.f32 %v225_v37  ;;  %v238_v43 = vand.u32 2147483648, %v225_v37  ;;  %v236_v47 = vand.u32 2147483647, %v225_v37  ;;  %vm232_vm8 = vweird.f32 %v225_v37 }
 0x1a2   :  { %v239_v51 = vor.u32 1.1754944e-38, %v238_v43  ;;  %vm237_vm13 = vcmp.eq.f32.partialorder %v236_v47, 8.507059e+37 }
 0x1a5   :  { %v220_v39 = vpop.f32.mrf.mxu1 }
 0x1a6   :  { %v568_v38 = vpop.eup %567  ;;  %vm224_vm7 = vcmp.gt.f32.partialorder %v220_v39, 0.0 }
 0x1a7   :  { %v228_v40 = vmul.f32 %v568_v38, %v225_v37  ;;  %v226_v41 = vsel %vm224_vm7, %v220_v39, 1.0  ;;  %vm233_vm10 = vweird.f32 %v568_v38 }
 0x1a8   :  { %569 = vrcp.f32 %v226_v41  ;;  %vm234_vm11 = vmor %vm232_vm8, %vm233_vm10  ;;  %v253_v61 = vand.u32 2147483648, %v226_v41  ;;  %v251_v63 = vand.u32 2147483647, %v226_v41  ;;  %vm247_vm15 = vweird.f32 %v226_v41 }
 0x1a9   :  { %v229_v42 = vsub.f32 1.0, %v228_v40 }
 0x1aa   :  { %vm252_vm10 = vcmp.eq.f32.partialorder %v251_v63, 8.507059e+37 }
 0x1ab   :  { %v230_v44 = vmul.f32 %v568_v38, %v229_v42 }
 0x1ad   :  { %v231_v48 = vadd.f32 %v568_v38, %v230_v44 }
 0x1ae   :  { %v419_v50 = vpop.f32.mrf.mxu1  ;;  %v570_v52 = vpop.eup %569 }
 0x1af   :  { %vm425_vm12 = vcmp.gt.f32.partialorder %v419_v50, 0.0  ;;  %v427_v54 = vmul.f32 %v419_v50, %v867_v46  ;;  %v235_v55 = vsel %vm234_vm11, %v568_v38, %v231_v48  ;;  %v243_v56 = vmul.f32 %v570_v52, %v226_v41 }
 0x1b0   :  { %v240_v57 = vsel %vm237_vm13, %v239_v51, %v235_v55  ;;  %vm248_vm14 = vweird.f32 %v570_v52  ;;  %v254_v46 = vor.u32 1.1754944e-38, %v253_v61 }
 0x1b1   :  { %v429_v58 = vsel %vm425_vm12, %v427_v54, 0.0625  ;;  %v257_v59 = vsel %vm223_vm9, %v240_v57, 0.0  ;;  %v244_v60 = vsub.f32 1.0, %v243_v56  ;;  %vm249_vm1 = vmor %vm247_vm15, %vm248_vm14 }
 0x1b2   :  { %445 = vst.msk [vmem:[#allocation11] sm:$0xff] %vm83_vm0, %v429_v58  ;;  %522 = vmatmul.msk.f32.vlgmr.msra.gmra.mxu2 %vm259_vm6, %v257_v59  ;;  %v433_v12 = vmul.f32 0.5, %v429_v58 }
 0x1b3   :  { %v245_v62 = vmul.f32 %v570_v52, %v244_v60 }
 0x1b5   :  { %v246_v0 = vadd.f32 %v570_v52, %v245_v62 }
 0x1b7   :  { %v250_v1 = vsel %vm249_vm1, %v570_v52, %v246_v0 }
 0x1b8   :  { %v255_v2 = vsel %vm252_vm10, %v254_v46, %v250_v1 }
 0x1b9   :  { %v258_v3 = vsel %vm224_vm7, %v255_v2, 0.0 }
 0x1ba   :  { %523 = vmatmul.msk.f32.gmra.mxu2 %vm259_vm6, %v258_v3  ;;  %vm437_vm6 = vmand %vm143_vm2, %vm801_vm3 }
 0x1bb   :  { %vm438_vm3 = vmand %vm144_vm5, %vm808_vm4 }
 0x1bc   :  { %v422_v4 = vpop.f32.mrf.mxu3 }
 0x1bd   :  { %vm426_vm9 = vcmp.gt.f32.partialorder %v422_v4, 0.0  ;;  %v428_v5 = vmul.f32 %v422_v4, %v874_v49 }
 0x1bf   :  { %v430_v6 = vsel %vm426_vm9, %v428_v5, 0.0625 }
 0x1c0   :  { %446 = vst.msk [vmem:[#allocation11 + $0x8] sm:$0xff] %vm83_vm0, %v430_v6 }
 0x235   :  { %v295_v8 = vpop.f32.mrf.mxu2 }
 0x236   :  { %vm301_vm8 = vcmp.gt.f32.partialorder %v295_v8, 0.0  ;;  %v303_v9 = vmul.f32 %v295_v8, %v910_v7  ;;  %v434_v7 = vmul.f32 0.5, %v430_v6 }
 0x238   :  { %v305_v11 = vsel %vm301_vm8, %v303_v9, 0.0625 }
 0x239   :  { %v431_v13 = vmul.f32 0.5, %v305_v11  ;;  %443 = vst.msk [vmem:[#allocation9] sm:$0xff] %vm83_vm0, %v305_v11 }
 0x23b   :  { %v435_v14 = vadd.f32 %v433_v12, %v431_v13 }
 0x23d   :  { %v439_v15 = vsel %vm437_vm6, %v435_v14, 0.0  ;;  %v298_v49 = vpop.f32.mrf.mxu2 }
 0x23e   :  { %441 = vst.msk [vmem:[#allocation8] sm:$0xff] %vm83_vm0, %v439_v15  ;;  %vm302_vm7 = vcmp.gt.f32.partialorder %v298_v49, 0.0  ;;  %v304_v10 = vmul.f32 %v298_v49, %v917_v18 }
 0x240   :  { %v306_v45 = vsel %vm302_vm7, %v304_v10, 0.0625 }
 0x241   :  { %v432_v17 = vmul.f32 0.5, %v306_v45  ;;  %444 = vst.msk [vmem:[#allocation9 + $0x8] sm:$0xff] %vm83_vm0, %v306_v45 }
 0x242   :  { %472 = dma.vmem_to_hbm [thread:$0]  %s465_s29, 256, %s467_s10, [#allocation10], %s724_s13, %s724_s13, %s725_s14  }
 0x243   :  { %v436_v18 = vadd.f32 %v434_v7, %v432_v17  ;;  %485 = dma.vmem_to_hbm [thread:$0]  %s478_s12, 256, %s480_s17, [#allocation10], %s724_s13, %s724_s13, %s725_s14  }
 0x245   :  { %v440_v19 = vsel %vm438_vm3, %v436_v18, 0.0 }
 0x246   :  { %442 = vst.msk [vmem:[#allocation8 + $0x8] sm:$0xff] %vm83_vm0, %v440_v19 }
 0x247   :  { %459 = dma.vmem_to_hbm [thread:$0]  %s452_s18, 256, %s454_s19, [#allocation4], %s724_s13, %s724_s13, %s725_s14  }
 0x248   :  { %719 = dma.done.wait [#allocation4], 256  }
 0x249   :  { %720 = vsyncadd [#allocation4], 4294967040 }
 0x24a   :  { %721 = dma.done.wait [#allocation10], 512  }
 0x24b   :  { %722 = vsyncadd [#allocation10], 4294966784 }
 0x24c   :  { %498 = vsyncpa [#allocation3], 1 }
 0x24d   :  { %499 = vsyncpa [#allocation6], 1 }
 0x24e   :  { %500 = vsyncpa [#allocation4], 1 }
 0x24f   :  { %501 = vsyncpa [#allocation10], 1 }

</bundles_post_ra>
